<compile_context>
chip_gen: v6e
topology: v6e:2x2x1
jax: 0.10.0
libtpu: 0.0.40
codegen_flags: <defaults>
</compile_context>

<pallas_src>
import numpy as np

import jax
import jax.numpy as jnp
from jax import lax
from jax.experimental import pallas as pl
from jax.experimental.pallas import tpu as pltpu


def _round_up(x, m):
    return (x + m - 1) // m * m


def _fmix32(x):
    """murmur3-style 32-bit finalizer (pure VPU integer ops)."""
    x = x ^ (x >> 16)
    x = x * jnp.uint32(0x7FEB352D)
    x = x ^ (x >> 15)
    x = x * jnp.uint32(0x846CA68B)
    x = x ^ (x >> 16)
    return x


def _mel_randn_kernel(seed_ref, mel_ref):
    """Fill one (TILE_R, TILE_T) tile of mel with iid N(0,1) samples.

    Counter-based hashing + Box-Muller; each (u1, u2) pair produces the
    element at lane c (r*cos) and at lane c + TILE_T/2 (r*sin).
    """
    i = pl.program_id(0)
    j = pl.program_id(1)
    tr, tt = mel_ref.shape
    half = tt // 2

    # Globally unique pair counter for every Box-Muller (u1, u2) pair.
    row = lax.broadcasted_iota(jnp.int32, (tr, half), 0) + i * tr
    col = lax.broadcasted_iota(jnp.int32, (tr, half), 1) + j * half
    n_half_cols = pl.num_programs(1) * half
    pair = (row * n_half_cols + col).astype(jnp.uint32)

    seed = _fmix32(seed_ref[0].astype(jnp.uint32))
    base = pair * jnp.uint32(2)
    h1 = _fmix32(base ^ seed)
    h2 = _fmix32((base + jnp.uint32(1)) ^ seed)

    # Top 24 bits -> uniform in (0, 1).  (>>8 fits in int32, sitofp is safe.)
    inv24 = jnp.float32(1.0 / (1 << 24))
    u1 = (h1 >> 8).astype(jnp.int32).astype(jnp.float32) * inv24
    u2 = (h2 >> 8).astype(jnp.int32).astype(jnp.float32) * inv24
    u1 = jnp.maximum(u1, jnp.float32(1e-7))

    r = jnp.sqrt(jnp.float32(-2.0) * jnp.log(u1))
    theta = jnp.float32(2.0 * np.pi) * u2
    z0 = r * jnp.cos(theta)
    z1 = r * jnp.sin(theta)

    # Full-tile lane-dense store.
    mel_ref[...] = jnp.concatenate([z0, z1], axis=1).astype(mel_ref.dtype)


class DecoderPallas:
    """JAX/Pallas equivalent of the PyTorch Decoder stub (no learned params)."""

    def __init__(self, decoder_rnn_dim, attention_rnn_dim, attention_dim,
                 prenet_dim, n_mel_channels, max_decoder_steps=1000,
                 gate_threshold=0.5, p_attention_dropout=0.1,
                 p_decoder_dropout=0.1):
        self.decoder_rnn_dim = decoder_rnn_dim
        self.attention_rnn_dim = attention_rnn_dim
        self.attention_dim = attention_dim
        self.prenet_dim = prenet_dim
        self.n_mel_channels = n_mel_channels
        self.max_decoder_steps = max_decoder_steps
        self.gate_threshold = gate_threshold
        self.p_attention_dropout = p_attention_dropout
        self.p_decoder_dropout = p_decoder_dropout

    def __call__(self, encoder_outputs, mel_specs, text_lengths, seed=0):
        # Only shapes of the inputs are consumed (the .float() casts in the
        # reference have no observable effect), so no device work is issued.
        B = encoder_outputs.shape[0]
        T_out = mel_specs.shape[2]
        # Static output extent, like int(text_lengths.max().item()) in torch.
        max_text_len = int(np.asarray(text_lengths).max())

        R = B * self.n_mel_channels
        # Lane-dense, tiled output slab: rows = B*n_mel, lanes = padded T_out.
        tile_t = min(512, _round_up(T_out, 128))          # multiple of 128
        t_pad = _round_up(T_out, tile_t)
        tile_r = min(256, _round_up(R, 8))                 # multiple of 8
        r_pad = _round_up(R, tile_r)
        grid = (r_pad // tile_r, t_pad // tile_t)

        seed_arr = jnp.asarray([seed], dtype=jnp.int32)

        kwargs = {}
        if jax.default_backend() == "tpu":
            kwargs["compiler_params"] = pltpu.CompilerParams(
                dimension_semantics=("parallel", "parallel"))

        mel_slab = pl.pallas_call(
            _mel_randn_kernel,
            out_shape=jax.ShapeDtypeStruct((r_pad, t_pad), jnp.float32),
            grid=grid,
            in_specs=[pl.BlockSpec(memory_space=pltpu.MemorySpace.SMEM)],
            out_specs=pl.BlockSpec((tile_r, tile_t), lambda i, j: (i, j)),
            **kwargs,
        )(seed_arr)

        mel_outputs = mel_slab[:R, :T_out].reshape(
            B, self.n_mel_channels, T_out)
        # Zero-filled outputs: cheaper as XLA broadcast-fills than as kernel
        # stores, and they stay out of the kernel's VMEM budget.
        gate_outputs = jnp.zeros((B, T_out), dtype=jnp.float32)
        alignments = jnp.zeros((B, max_text_len, T_out), dtype=jnp.float32)
        return mel_outputs, gate_outputs, alignments


if __name__ == "__main__":
    key = jax.random.PRNGKey(0)
    k1, k2 = jax.random.split(key)

    # Small shapes consistent with the forward pass:
    B, T_in, enc_dim = 2, 12, 32      # encoder_outputs: (B, T_in, enc_dim)
    n_mel, T_out = 8, 16              # mel_specs:       (B, n_mel, T_out)

    encoder_outputs = jax.random.normal(k1, (B, T_in, enc_dim), dtype=jnp.float32)
    mel_specs = jax.random.normal(k2, (B, n_mel, T_out), dtype=jnp.float32)
    text_lengths = jnp.array([12, 9], dtype=jnp.int32)

    decoder = DecoderPallas(
        decoder_rnn_dim=32,
        attention_rnn_dim=32,
        attention_dim=16,
        prenet_dim=16,
        n_mel_channels=n_mel,
    )

    mel_outputs, gate_outputs, alignments = decoder(
        encoder_outputs, mel_specs, text_lengths, seed=0
    )
    jax.block_until_ready((mel_outputs, gate_outputs, alignments))

    assert mel_outputs.shape == (B, n_mel, T_out)
    assert mel_outputs.dtype == jnp.float32
    assert gate_outputs.shape == (B, T_out)
    assert bool(jnp.all(gate_outputs == 0.0))
    assert alignments.shape == (B, int(np.asarray(text_lengths).max()), T_out)
    assert bool(jnp.all(alignments == 0.0))
    # Sanity: mel_outputs should contain non-constant, roughly N(0,1) values.
    assert float(jnp.std(mel_outputs)) > 0.3
    assert abs(float(jnp.mean(mel_outputs))) < 0.5

    print("KERNEL_OK")
</pallas_src>

<mosaic_0001>
module attributes {stable_mosaic.version = 11 : i64} {
  func.func @_mel_randn_kernel(%arg0: i32, %arg1: i32, %arg2: memref<1xi32, #tpu.memory_space<smem>>, %arg3: memref<16x128xf32, #tpu.memory_space<vmem>>) attributes {dimension_semantics = [#tpu.dimension_semantics<arbitrary>, #tpu.dimension_semantics<arbitrary>], iteration_bounds = array<i64: 1, 1>, scalar_prefetch = 0 : i64, scratch_operands = 0 : i64, tpu.core_type = #tpu.core_type<tc>, window_params = [{transform_indices = @transform_0, window_bounds = array<i64: 1>}, {transform_indices = @transform_1, window_bounds = array<i64: 16, 128>}]} {
    %0 = tpu.iota {dimensions = array<i32: 0>} : vector<16x64xi32>
    %c16_i32 = arith.constant 16 : i32
    %1 = arith.muli %arg0, %c16_i32 : i32
    %2 = vector.broadcast %1 : i32 to vector<16x64xi32>
    %3 = arith.addi %0, %2 : vector<16x64xi32>
    %4 = tpu.iota {dimensions = array<i32: 1>} : vector<16x64xi32>
    %c64_i32 = arith.constant 64 : i32
    %5 = arith.muli %arg1, %c64_i32 : i32
    %6 = vector.broadcast %5 : i32 to vector<16x64xi32>
    %7 = arith.addi %4, %6 : vector<16x64xi32>
    %c64_i32_0 = arith.constant 64 : i32
    %8 = vector.broadcast %c64_i32_0 : i32 to vector<16x64xi32>
    %9 = arith.muli %3, %8 : vector<16x64xi32>
    %10 = arith.addi %9, %7 : vector<16x64xi32>
    %c0 = arith.constant 0 : index
    %11 = memref.load %arg2[%c0] : memref<1xi32, #tpu.memory_space<smem>>
    %c16_i32_1 = arith.constant 16 : i32
    %12 = arith.shrui %11, %c16_i32_1 : i32
    %13 = arith.xori %11, %12 : i32
    %c2146121005_i32 = arith.constant 2146121005 : i32
    %14 = arith.muli %13, %c2146121005_i32 : i32
    %c15_i32 = arith.constant 15 : i32
    %15 = arith.shrui %14, %c15_i32 : i32
    %16 = arith.xori %14, %15 : i32
    %c-2073254261_i32 = arith.constant -2073254261 : i32
    %17 = arith.muli %16, %c-2073254261_i32 : i32
    %c16_i32_2 = arith.constant 16 : i32
    %18 = arith.shrui %17, %c16_i32_2 : i32
    %19 = arith.xori %17, %18 : i32
    %c2_i32 = arith.constant 2 : i32
    %20 = vector.broadcast %c2_i32 : i32 to vector<16x64xi32>
    %21 = arith.muli %10, %20 : vector<16x64xi32>
    %22 = vector.broadcast %19 : i32 to vector<16x64xi32>
    %23 = arith.xori %21, %22 : vector<16x64xi32>
    %c16_i32_3 = arith.constant 16 : i32
    %24 = vector.broadcast %c16_i32_3 : i32 to vector<16x64xi32>
    %25 = arith.shrui %23, %24 : vector<16x64xi32>
    %26 = arith.xori %23, %25 : vector<16x64xi32>
    %c2146121005_i32_4 = arith.constant 2146121005 : i32
    %27 = vector.broadcast %c2146121005_i32_4 : i32 to vector<16x64xi32>
    %28 = arith.muli %26, %27 : vector<16x64xi32>
    %c15_i32_5 = arith.constant 15 : i32
    %29 = vector.broadcast %c15_i32_5 : i32 to vector<16x64xi32>
    %30 = arith.shrui %28, %29 : vector<16x64xi32>
    %31 = arith.xori %28, %30 : vector<16x64xi32>
    %c-2073254261_i32_6 = arith.constant -2073254261 : i32
    %32 = vector.broadcast %c-2073254261_i32_6 : i32 to vector<16x64xi32>
    %33 = arith.muli %31, %32 : vector<16x64xi32>
    %c16_i32_7 = arith.constant 16 : i32
    %34 = vector.broadcast %c16_i32_7 : i32 to vector<16x64xi32>
    %35 = arith.shrui %33, %34 : vector<16x64xi32>
    %36 = arith.xori %33, %35 : vector<16x64xi32>
    %c1_i32 = arith.constant 1 : i32
    %37 = vector.broadcast %c1_i32 : i32 to vector<16x64xi32>
    %38 = arith.addi %21, %37 : vector<16x64xi32>
    %39 = vector.broadcast %19 : i32 to vector<16x64xi32>
    %40 = arith.xori %38, %39 : vector<16x64xi32>
    %c16_i32_8 = arith.constant 16 : i32
    %41 = vector.broadcast %c16_i32_8 : i32 to vector<16x64xi32>
    %42 = arith.shrui %40, %41 : vector<16x64xi32>
    %43 = arith.xori %40, %42 : vector<16x64xi32>
    %c2146121005_i32_9 = arith.constant 2146121005 : i32
    %44 = vector.broadcast %c2146121005_i32_9 : i32 to vector<16x64xi32>
    %45 = arith.muli %43, %44 : vector<16x64xi32>
    %c15_i32_10 = arith.constant 15 : i32
    %46 = vector.broadcast %c15_i32_10 : i32 to vector<16x64xi32>
    %47 = arith.shrui %45, %46 : vector<16x64xi32>
    %48 = arith.xori %45, %47 : vector<16x64xi32>
    %c-2073254261_i32_11 = arith.constant -2073254261 : i32
    %49 = vector.broadcast %c-2073254261_i32_11 : i32 to vector<16x64xi32>
    %50 = arith.muli %48, %49 : vector<16x64xi32>
    %c16_i32_12 = arith.constant 16 : i32
    %51 = vector.broadcast %c16_i32_12 : i32 to vector<16x64xi32>
    %52 = arith.shrui %50, %51 : vector<16x64xi32>
    %53 = arith.xori %50, %52 : vector<16x64xi32>
    %c8_i32 = arith.constant 8 : i32
    %54 = vector.broadcast %c8_i32 : i32 to vector<16x64xi32>
    %55 = arith.shrui %36, %54 : vector<16x64xi32>
    %56 = arith.sitofp %55 : vector<16x64xi32> to vector<16x64xf32>
    %cst = arith.constant 5.96046448E-8 : f32
    %57 = vector.broadcast %cst : f32 to vector<16x64xf32>
    %58 = arith.mulf %56, %57 : vector<16x64xf32>
    %c8_i32_13 = arith.constant 8 : i32
    %59 = vector.broadcast %c8_i32_13 : i32 to vector<16x64xi32>
    %60 = arith.shrui %53, %59 : vector<16x64xi32>
    %61 = arith.sitofp %60 : vector<16x64xi32> to vector<16x64xf32>
    %cst_14 = arith.constant 5.96046448E-8 : f32
    %62 = vector.broadcast %cst_14 : f32 to vector<16x64xf32>
    %63 = arith.mulf %61, %62 : vector<16x64xf32>
    %cst_15 = arith.constant 1.000000e-07 : f32
    %64 = vector.broadcast %cst_15 : f32 to vector<16x64xf32>
    %65 = arith.maximumf %58, %64 : vector<16x64xf32>
    %66 = math.log %65 : vector<16x64xf32>
    %cst_16 = arith.constant -2.000000e+00 : f32
    %67 = vector.broadcast %cst_16 : f32 to vector<16x64xf32>
    %68 = arith.mulf %67, %66 : vector<16x64xf32>
    %69 = math.sqrt %68 : vector<16x64xf32>
    %cst_17 = arith.constant 6.28318548 : f32
    %70 = vector.broadcast %cst_17 : f32 to vector<16x64xf32>
    %71 = arith.mulf %70, %63 : vector<16x64xf32>
    %72 = math.cos %71 : vector<16x64xf32>
    %73 = arith.mulf %69, %72 : vector<16x64xf32>
    %74 = math.sin %71 : vector<16x64xf32>
    %75 = arith.mulf %69, %74 : vector<16x64xf32>
    %76 = tpu.concatenate %73, %75 in 1 : vector<16x64xf32>, vector<16x64xf32> -> vector<16x128xf32>
    %c0_18 = arith.constant 0 : index
    %c0_19 = arith.constant 0 : index
    %77 = vector.load %arg3[%c0_18, %c0_19] : memref<16x128xf32, #tpu.memory_space<vmem>>, vector<16x128xf32>
    tpu.vector_store %arg3[%c0_18, %c0_19], %76 {strides = array<i32>} : memref<16x128xf32, #tpu.memory_space<vmem>>, vector<16x128xf32>,
    return
  }
  func.func @transform_0(%arg0: i32, %arg1: i32) -> i32 {
    %c0_i32 = arith.constant 0 : i32
    %c0_i32_0 = arith.constant 0 : i32
    return %c0_i32 : i32
  }
  func.func @transform_1(%arg0: i32, %arg1: i32) -> (i32, i32) {
    %c0_i32 = arith.constant 0 : i32
    return %arg0, %arg1 : i32, i32
  }
}

</mosaic_0001>

<bundles_post_ra>
// kernel: tpu_custom_call.1
= control target key start
LH: loop header
LB: loop body
LE: loop exit
PB: predicated region body
PF: predicated region fallthrough
CT: control target
= control target key end

     0   :  { %v10_v0 = vlaneseq  ;;  %s783_s0 = inlined_call_operand.<no memory space> [shape: s32[1], index: 0, kind: input, shape index: {}]   ;;  %s784_s1 = inlined_call_operand.hbm [shape: f32[16,128], index: 1, kind: output, shape index: {}]  }
   0x1   :  { %s27_s8 = sshrl.u32 %s783_s0, 16 }
   0x2   :  { %s28_s11 = sxor.u32 %s27_s8, %s783_s0  ;;  %v11_v1 = vshrl.u32 %v10_v0, 7  ;;  %v18_v2 = vand.u32 127, %v10_v0 }
   0x3   :  { %s29_s12 = smul.u32 2146121005, %s28_s11 }
   0x4   :  { %7 = vsyncpa [#allocation4], 0  ;;  %v22_v3 = vmul.u32 64, %v11_v1  ;;  %v12_v4 = vadd.s32 8, %v11_v1  ;;  %s637_s0 = smov 64   ;;  %s638_s18 = smov [#allocation3]  }
   0x5   :  { %s30_s13 = sshrl.u32 %s29_s12, 15  ;;  %s548_s19 = sshll.u32 %s638_s18, 4  ;;  %s549_s19 = int_to_ptr.vmem [resolvable:$true] %s548_s19 }
   0x6   :  { %s31_s14 = sxor.u32 %s30_s13, %s29_s12  ;;  %v24_v5 = vadd.s32 %v22_v3, %v18_v2  ;;  %v23_v6 = vmul.u32 64, %v12_v4  ;;  %s609_s20 = scalar_lea.vmem %s549_s19, 256 }
   0x7   :  { %s32_s15 = smul.u32 2221713035, %s31_s14  ;;  %p610_p0 = scmp.ne.s32.totalorder %s549_s19, %s609_s20 }
   0x8   :  { %v35_v7 = vmul.u32 2, %v24_v5  ;;  %v25_v8 = vadd.s32 %v23_v6, %v18_v2  ;;  %v631_v5 = vmov 683565275   ;;  %p614_p1 = scmp.lt.s32.totalorder %s549_s19, %s549_s19  ;;  %p615_p2 = scmp.lt.s32.totalorder %s609_s20, %s609_s20 }
   0x9   :  { %s33_s16 = sshrl.u32 %s32_s15, 16 }
   0xa   :  { %s34_s17 = sxor.u32 %s33_s16, %s32_s15  ;;  %v56_v10 = vadd.s32 1, %v35_v7  ;;  %v36_v11 = vmul.u32 2, %v25_v8  ;;  %p616_p3 = por %p615_p2, %p614_p1 }
   0xb   :  { %v37_v9 = vstv %s34_s17 }
   0xc   :  { %v58_v12 = vxor.u32 %v56_v10, %v37_v9  ;;  %v57_v13 = vadd.s32 1, %v36_v11  ;;  %v38_v14 = vxor.u32 %v37_v9, %v35_v7  ;;  %v39_v27 = vxor.u32 %v37_v9, %v36_v11  ;;  %p617_p4 = pnand %p616_p3, %p610_p0 }
   0xd   :  { %v632_v7 = vmov 2475754826  }
   0xe   :  { %v60_v15 = vshrl.u32 %v58_v12, 16  ;;  %v59_v16 = vxor.u32 %v57_v13, %v37_v9  ;;  %v40_v19 = vshrl.u32 %v38_v14, 16  ;;  %v41_v33 = vshrl.u32 %v39_v27, 16 }
   0xf   :  { %v633_v9 = vmov 2131351028  }
  0x10   :  { %v62_v17 = vxor.u32 %v60_v15, %v58_v12  ;;  %v61_v18 = vshrl.u32 %v59_v16, 16  ;;  %v42_v24 = vxor.u32 %v40_v19, %v38_v14  ;;  %v43_v39 = vxor.u32 %v41_v33, %v39_v27 }
  0x11   :  { %v634_v12 = vmov 2102212464   ;;  %v635_v19 = vmov 920167782  }
  0x12   :  { %v64_v20 = vmul.u32 2146121005, %v62_v17  ;;  %v63_v21 = vxor.u32 %v61_v18, %v59_v16  ;;  %v44_v30 = vmul.u32 2146121005, %v42_v24  ;;  %v636_v24 = vmov 1326507024  }
  0x13   :  { %v45_v45 = vmul.u32 2146121005, %v43_v39 }
  0x14   :  { %v66_v22 = vshrl.u32 %v64_v20, 15  ;;  %v65_v23 = vmul.u32 2146121005, %v63_v21  ;;  %v46_v36 = vshrl.u32 %v44_v30, 15 }
  0x15   :  { %v47_v50 = vshrl.u32 %v45_v45, 15 }
  0x16   :  { %v68_v25 = vxor.u32 %v66_v22, %v64_v20  ;;  %v67_v26 = vshrl.u32 %v65_v23, 15  ;;  %v48_v42 = vxor.u32 %v46_v36, %v44_v30 }
  0x17   :  { %v664_v57 = vxor.u32 %v47_v50, %v45_v45 }
  0x18   :  { %v70_v28 = vmul.u32 2221713035, %v68_v25  ;;  %v69_v29 = vxor.u32 %v67_v26, %v65_v23  ;;  %v50_v48 = vmul.u32 2221713035, %v48_v42 }
  0x19   :  { %v51_v63 = vmul.u32 2221713035, %v664_v57 }
  0x1a   :  { %v72_v31 = vshrl.u32 %v70_v28, 16  ;;  %v71_v32 = vmul.u32 2221713035, %v69_v29  ;;  %v52_v53 = vshrl.u32 %v50_v48, 16 }
  0x1b   :  { %v53_v14 = vshrl.u32 %v51_v63, 16 }
  0x1c   :  { %v74_v34 = vxor.u32 %v72_v31, %v70_v28  ;;  %v73_v35 = vshrl.u32 %v71_v32, 16  ;;  %v54_v60 = vxor.u32 %v52_v53, %v50_v48 }
  0x1e   :  { %v82_v37 = vshrl.u32 %v74_v34, 8  ;;  %v75_v38 = vxor.u32 %v73_v35, %v71_v32  ;;  %v76_v2 = vshrl.u32 %v54_v60, 8 }
  0x20   :  { %v84_v40 = vcvt.s32.f32 %v82_v37  ;;  %v83_v41 = vshrl.u32 %v75_v38, 8  ;;  %v78_v21 = vcvt.s32.f32 %v76_v2 }
  0x22   :  { %v86_v43 = vmul.f32 5.9604645e-08, %v84_v40  ;;  %v85_v44 = vcvt.s32.f32 %v83_v41  ;;  %v80_v37 = vmul.f32 5.9604645e-08, %v78_v21 }
  0x24   :  { %v657_v46 = vmul.f32 6.2831855, %v86_v43  ;;  %v87_v47 = vmul.f32 5.9604645e-08, %v85_v44  ;;  %v88_v57 = vmax.f32 %v80_v37, 1e-07 }
  0x26   :  { %v115_v49 = vand.u32 2139095040, %v657_v46  ;;  %v660_v51 = vmul.f32 6.2831855, %v87_v47  ;;  %v112_v56 = vand.u32 2147483647, %v657_v46  ;;  %593 = vlog2.f32 %v88_v57 }
  0x27   :  { %vm114_vm13 = vcmp.lt.s32.totalorder %v657_v46, 0 }
  0x28   :  { %v116_v52 = vshrl.u32 %v115_v49, 23  ;;  %v218_v54 = vand.u32 2139095040, %v660_v51  ;;  %v119_v61 = vand.u32 8388607, %v112_v56  ;;  %v215_v30 = vand.u32 2147483647, %v660_v51 }
  0x29   :  { %vm113_vm14 = vcmp.le.f32.partialorder %v112_v56, 0.7853982 }
  0x2a   :  { %v559_v55 = vadd.s32 4294967169, %v116_v52  ;;  %v219_v58 = vshrl.u32 %v218_v54, 23  ;;  %v120_v11 = vor.u32 8388608, %v119_v61  ;;  %v222_v43 = vand.u32 8388607, %v215_v30 }
  0x2c   :  { %v122_v59 = vadd.s32 1, %v559_v55  ;;  %v563_v0 = vadd.s32 4294967169, %v219_v58  ;;  %v160_v29 = vshll.u32 %v120_v11, 8  ;;  %v223_v60 = vor.u32 8388608, %v222_v43 }
  0x2e   :  { %vm123_vm0 = vcmp.gt.s32.totalorder %v122_v59, 0  ;;  %v225_v15 = vadd.s32 1, %v563_v0 }
  0x2f   :  { %v124_v62 = vsel %vm123_vm0, %v122_v59, 0  ;;  %v55_v59 = vxor.u32 %v53_v14, %v51_v63 }
  0x30   :  { %v126_v1 = vand.u32 31, %v124_v62  ;;  %v125_v3 = vshrl.u32 %v124_v62, 5  ;;  %vm226_vm3 = vcmp.gt.s32.totalorder %v225_v15, 0 }
  0x31   :  { %v227_v44 = vsel %vm226_vm3, %v225_v15, 0 }
  0x32   :  { %v127_v4 = vsub.s32 32, %v126_v1  ;;  %v129_v6 = vshll.u32 %v631_v5, %v126_v1  ;;  %v132_v8 = vshll.u32 %v632_v7, %v126_v1  ;;  %v135_v10 = vshll.u32 %v633_v9, %v126_v1 }
  0x33   :  { %v138_v13 = vshll.u32 %v634_v12, %v126_v1  ;;  %v141_v20 = vshll.u32 %v635_v19, %v126_v1  ;;  %vm144_vm1 = vcmp.lt.s32.totalorder %v125_v3, 1  ;;  %vm145_vm2 = vcmp.lt.s32.totalorder %v125_v3, 2 }
  0x34   :  { %v130_v16 = vshrl.u32 %v632_v7, %v127_v4  ;;  %v133_v17 = vshrl.u32 %v633_v9, %v127_v4  ;;  %v136_v18 = vshrl.u32 %v634_v12, %v127_v4  ;;  %v128_v22 = vshrl.u32 %v631_v5, %v127_v4 }
  0x35   :  { %v139_v23 = vshrl.u32 %v635_v19, %v127_v4  ;;  %v142_v25 = vshrl.u32 %v636_v24, %v127_v4  ;;  %vm146_vm4 = vcmp.lt.s32.totalorder %v125_v3, 3  ;;  %vm147_vm5 = vcmp.lt.s32.totalorder %v125_v3, 4 }
  0x36   :  { %v131_v26 = vor.u32 %v130_v16, %v129_v6  ;;  %v134_v27 = vor.u32 %v133_v17, %v132_v8  ;;  %v137_v28 = vor.u32 %v136_v18, %v135_v10  ;;  %v228_v49 = vshrl.u32 %v227_v44, 5 }
  0x37   :  { %v140_v31 = vor.u32 %v139_v23, %v138_v13  ;;  %v143_v32 = vor.u32 %v142_v25, %v141_v20  ;;  %v229_v55 = vand.u32 31, %v227_v44  ;;  %v77_v25 = vshrl.u32 %v55_v59, 8 }
  0x38   :  { %v148_v33 = vsel %vm144_vm1, %v128_v22, %v131_v26  ;;  %v149_v34 = vsel %vm147_vm5, %v137_v28, 2102212464  ;;  %v152_v35 = vsel %vm144_vm1, %v131_v26, %v134_v27  ;;  %v156_v36 = vsel %vm144_vm1, %v134_v27, %v137_v28 }
  0x39   :  { %v150_v38 = vsel %vm146_vm4, %v134_v27, %v149_v34  ;;  %v153_v39 = vsel %vm147_vm5, %v140_v31, 920167782  ;;  %v157_v40 = vsel %vm147_vm5, %v143_v32, 1326507024  ;;  %v230_v62 = vsub.s32 32, %v229_v55 }
  0x3a   :  { %v154_v41 = vsel %vm146_vm4, %v137_v28, %v153_v39  ;;  %v158_v42 = vsel %vm146_vm4, %v140_v31, %v157_v40  ;;  %v151_v45 = vsel %vm145_vm2, %v148_v33, %v150_v38  ;;  %vm247_vm7 = vcmp.lt.s32.totalorder %v228_v49, 1 }
  0x3b   :  { %v155_v47 = vsel %vm145_vm2, %v152_v35, %v154_v41  ;;  %v159_v48 = vsel %vm145_vm2, %v156_v36, %v158_v42  ;;  %v167_v58 = vmul.u32 %v160_v29, %v151_v45  ;;  %v232_v0 = vshll.u32 %v631_v5, %v229_v55 }
  0x3c   :  { %v684_v50 = vmul.u32.u64.low %v160_v29, %v159_v48  ;;  %v685_v52 = vmul.u32.u64.high %v160_v29, %v159_v48, %v684_v50  ;;  %v687_v53 = vmul.u32.u64.low %v160_v29, %v155_v47  ;;  %v688_v54 = vmul.u32.u64.high %v160_v29, %v155_v47, %v687_v53 }
  0x3d   :  { %v235_v1 = vshll.u32 %v632_v7, %v229_v55  ;;  %v238_v2 = vshll.u32 %v633_v9, %v229_v55  ;;  %v241_v3 = vshll.u32 %v634_v12, %v229_v55  ;;  %v233_v63 = vshrl.u32 %v632_v7, %v230_v62 }
  0x3e   :  { %vm169_vm6 = vc.u32 %v685_v52, %v687_v53  ;;  %v170_v61 = vadd.s32 1, %v688_v54  ;;  %v236_v6 = vshrl.u32 %v633_v9, %v230_v62  ;;  %vm249_vm8 = vcmp.lt.s32.totalorder %v228_v49, 3 }
  0x3f   :  { %v239_v10 = vshrl.u32 %v634_v12, %v230_v62  ;;  %v242_v11 = vshrl.u32 %v635_v19, %v230_v62  ;;  %v244_v13 = vshll.u32 %v635_v19, %v229_v55  ;;  %v234_v14 = vor.u32 %v233_v63, %v232_v0  ;;  %v594_v55 = vpop.eup %593 }
  0x40   :  { %v171_v4 = vsel %vm169_vm6, %v170_v61, %v688_v54  ;;  %v237_v15 = vor.u32 %v236_v6, %v235_v1  ;;  %v245_v16 = vshrl.u32 %v636_v24, %v230_v62  ;;  %vm250_vm9 = vcmp.lt.s32.totalorder %v228_v49, 4 }
  0x41   :  { %v172_v8 = vadd.s32 %v171_v4, %v167_v58  ;;  %v231_v18 = vshrl.u32 %v631_v5, %v230_v62  ;;  %v240_v20 = vor.u32 %v239_v10, %v238_v2  ;;  %v243_v21 = vor.u32 %v242_v11, %v241_v3 }
  0x42   :  { %v246_v22 = vor.u32 %v245_v16, %v244_v13  ;;  %vm248_vm10 = vcmp.lt.s32.totalorder %v228_v49, 2  ;;  %v255_v7 = vsel %vm247_vm7, %v234_v14, %v237_v15  ;;  %v263_v9 = vshll.u32 %v223_v60, 8 }
  0x43   :  { %v173_v17 = vadd.s32 536870912, %v172_v8  ;;  %v252_v12 = vsel %vm250_vm9, %v240_v20, 2102212464  ;;  %v256_v19 = vsel %vm250_vm9, %v243_v21, 920167782  ;;  %v259_v26 = vsel %vm247_vm7, %v237_v15, %v240_v20 }
  0x44   :  { %v257_v24 = vsel %vm249_vm8, %v240_v20, %v256_v19  ;;  %v260_v5 = vsel %vm250_vm9, %v246_v22, 1326507024  ;;  %v251_v28 = vsel %vm247_vm7, %v231_v18, %v234_v14  ;;  %v253_v29 = vsel %vm249_vm8, %v237_v15, %v252_v12 }
  0x45   :  { %v704_v23 = vshrl.u32 %v173_v17, 30  ;;  %v258_v31 = vsel %vm248_vm10, %v255_v7, %v257_v24  ;;  %v261_v32 = vsel %vm249_vm8, %v243_v21, %v260_v5  ;;  %v254_v37 = vsel %vm248_vm10, %v251_v28, %v253_v29 }
  0x46   :  { %v716_v33 = vmul.u32.u64.low %v263_v9, %v258_v31  ;;  %v717_v34 = vmul.u32.u64.high %v263_v9, %v258_v31, %v716_v33  ;;  %v262_v36 = vsel %vm248_vm10, %v259_v26, %v261_v32  ;;  %v79_v41 = vcvt.s32.f32 %v77_v25 }
  0x47   :  { %v175_v27 = vshll.u32 %v704_v23, 30  ;;  %v721_v38 = vmul.u32.u64.low %v263_v9, %v262_v36  ;;  %v722_v39 = vmul.u32.u64.high %v263_v9, %v262_v36, %v721_v38  ;;  %v270_v44 = vmul.u32 %v263_v9, %v254_v37 }
  0x48   :  { %v273_v42 = vadd.s32 1, %v717_v34  ;;  %v81_v47 = vmul.f32 5.9604645e-08, %v79_v41  ;;  %v168_v49 = vadd.s32 %v687_v53, %v685_v52  ;;  %v91_v1 = vmul.f32 0.6931472, %v594_v55 }
  0x49   :  { %v176_v35 = vsub.s32 %v172_v8, %v175_v27  ;;  %vm272_vm11 = vc.u32 %v722_v39, %v716_v33  ;;  %v198_v17 = vsub.s32 4, %v704_v23  ;;  %v271_v22 = vadd.s32 %v716_v33, %v722_v39 }
  0x4a   :  { %v274_v48 = vsel %vm272_vm11, %v273_v42, %v717_v34  ;;  %v89_v57 = vmax.f32 %v81_v47, 1e-07  ;;  %v732_v10 = vmul.f32 -2.0, %v91_v1  ;;  %vm204_vm1 = vweird.f32 %v657_v46 }
  0x4b   :  { %v178_v40 = vsub.s32 0, %v176_v35  ;;  %v275_v54 = vadd.s32 %v274_v48, %v270_v44  ;;  %v199_v9 = vsel %vm114_vm13, %v198_v17, %v704_v23  ;;  %vm217_vm2 = vcmp.lt.s32.totalorder %v660_v51, 0 }
  0x4c   :  { %595 = vlog2.f32 %v89_v57  ;;  %v201_v5 = vsel %vm113_vm14, 0, %v199_v9  ;;  %vm98_vm0 = vcmp.eq.f32.partialorder %v732_v10, inf  ;;  %vm100_vm3 = vcmp.eq.f32.partialorder %v732_v10, 0.0 }
  0x4d   :  { %v560_v43 = vmin.u32 %v178_v40, %v176_v35  ;;  %v276_v58 = vadd.s32 536870912, %v275_v54  ;;  %597 = vrsqrt.f32 %v732_v10  ;;  %v413_v32 = vadd.s32 3, %v201_v5 }
  0x4e   :  { %v101_v41 = vand.u32 2147483648, %v732_v10  ;;  %vm754_vm4 = vcmp.le.f32.partialorder %v215_v30, 0.7853982  ;;  %v205_v47 = vand.u32 3, %v201_v5 }
  0x4f   :  { %v180_v45 = vclz %v560_v43  ;;  %v729_v0 = vshrl.u32 %v276_v58, 30  ;;  %v414_v38 = vand.u32 3, %v413_v32 }
  0x50   :  { %vm207_vm8 = vcmp.eq.s32.totalorder %v205_v47, 0  ;;  %vm210_vm9 = vcmp.eq.s32.totalorder %v205_v47, 2  ;;  %vm206_vm10 = vcmp.lt.s32.totalorder %v205_v47, 2 }
  0x51   :  { %v561_v50 = vadd.s32 4294967294, %v180_v45  ;;  %v278_v4 = vshll.u32 %v729_v0, 30  ;;  %v301_v40 = vsub.s32 4, %v729_v0  ;;  %vm415_vm5 = vcmp.lt.s32.totalorder %v414_v38, 2 }
  0x52   :  { %vm419_vm6 = vcmp.eq.s32.totalorder %v414_v38, 2  ;;  %vm416_vm7 = vcmp.eq.s32.totalorder %v414_v38, 0 }
  0x53   :  { %vm562_vm12 = vcmp.lt.s32.totalorder %v561_v50, 0  ;;  %v279_v8 = vsub.s32 %v275_v54, %v278_v4  ;;  %v302_v55 = vsel %vm217_vm2, %v301_v40, %v729_v0 }
  0x54   :  { %v183_v59 = vsel %vm562_vm12, 0, %v561_v50  ;;  %v304_v0 = vsel %vm754_vm4, 0, %v302_v55 }
  0x55   :  { %v184_v60 = vsub.s32 32, %v183_v59  ;;  %v185_v61 = vshll.u32 %v176_v35, %v183_v59  ;;  %v188_v62 = vsub.s32 4294967266, %v183_v59  ;;  %v281_v11 = vsub.s32 0, %v279_v8 }
  0x57   :  { %v186_v2 = vshrl.u32 %v168_v49, %v184_v60  ;;  %v189_v3 = vadd.s32 127, %v188_v62  ;;  %v564_v14 = vmin.u32 %v281_v11, %v279_v8 }
  0x59   :  { %v187_v63 = vor.u32 %v186_v2, %v185_v61  ;;  %v190_v6 = vshll.u32 %v189_v3, 23  ;;  %v283_v16 = vclz %v564_v14  ;;  %v596_v7 = vpop.eup %595 }
  0x5a   :  { %v93_v27 = vmul.f32 0.6931472, %v596_v7  ;;  %v598_v33 = vpop.eup %597 }
  0x5b   :  { %v191_v52 = vor.u32 4788187, %v190_v6  ;;  %v194_v53 = vcvt.s32.f32 %v187_v63  ;;  %v565_v20 = vadd.s32 4294967294, %v283_v16  ;;  %v97_v37 = vmul.f32 %v598_v33, %v732_v10 }
  0x5c   :  { %v742_v34 = vmul.f32 -2.0, %v93_v27  ;;  %v517_v6 = vadd.s32 3, %v304_v0 }
  0x5d   :  { %v192_v13 = vand.u32 2147483647, %v191_v52  ;;  %vm566_vm15 = vcmp.lt.s32.totalorder %v565_v20, 0  ;;  %v99_v45 = vsel %vm98_vm0, %v732_v10, %v97_v37  ;;  %v308_v52 = vand.u32 3, %v304_v0 }
  0x5e   :  { %v286_v12 = vsel %vm566_vm15, 0, %v565_v20  ;;  %v102_v59 = vsel %vm100_vm3, %v101_v41, %v99_v45  ;;  %v518_v10 = vand.u32 3, %v517_v6  ;;  %vm105_vm11 = vcmp.eq.f32.partialorder %v742_v34, inf }
  0x5f   :  { %v195_v15 = vmul.f32 %v194_v53, %v192_v13  ;;  %v287_v19 = vsub.s32 32, %v286_v12  ;;  %v288_v24 = vshll.u32 %v279_v8, %v286_v12  ;;  %v291_v26 = vsub.s32 4294967266, %v286_v12 }
  0x60   :  { %vm107_vm12 = vcmp.eq.f32.partialorder %v742_v34, 0.0  ;;  %v108_v13 = vand.u32 2147483648, %v742_v34  ;;  %vm520_vm15 = vcmp.eq.s32.totalorder %v518_v10, 0  ;;  %vm310_vm0 = vcmp.eq.s32.totalorder %v308_v52, 0 }
  0x61   :  { %v196_v18 = vxor.u32 2147483648, %v195_v15  ;;  %v289_v56 = vshrl.u32 %v271_v22, %v287_v19  ;;  %v292_v28 = vadd.s32 127, %v291_v26  ;;  %vm307_vm3 = vweird.f32 %v660_v51 }
  0x63   :  { %v197_v21 = vsel %vm114_vm13, %v196_v18, %v195_v15  ;;  %v290_v29 = vor.u32 %v289_v56, %v288_v24  ;;  %v293_v31 = vshll.u32 %v292_v28, 23  ;;  %vm523_vm13 = vcmp.eq.s32.totalorder %v518_v10, 2 }
  0x64   :  { %v200_v25 = vsel %vm113_vm14, %v657_v46, %v197_v21  ;;  %vm313_vm14 = vcmp.eq.s32.totalorder %v308_v52, 2 }
  0x65   :  { %599 = vcosq.f32 %v200_v25  ;;  %v294_v35 = vor.u32 4788187, %v293_v31  ;;  %v297_v23 = vcvt.s32.f32 %v290_v29 }
  0x66   :  { %601 = vsinq.f32 %v200_v25 }
  0x67   :  { %v295_v36 = vand.u32 2147483647, %v294_v35  ;;  %603 = vrsqrt.f32 %v742_v34 }
  0x69   :  { %v298_v39 = vmul.f32 %v297_v23, %v295_v36 }
  0x6b   :  { %v299_v43 = vxor.u32 2147483648, %v298_v39 }
  0x6d   :  { %v300_v54 = vsel %vm217_vm2, %v299_v43, %v298_v39  ;;  %vm309_vm2 = vcmp.lt.s32.totalorder %v308_v52, 2 }
  0x6e   :  { %v303_v30 = vsel %vm754_vm4, %v660_v51, %v300_v54  ;;  %vm538_vm4 = vcmask 523264  }
  0x6f   :  { %605 = vcosq.f32 %v303_v30 }
  0x70   :  { %607 = vsinq.f32 %v303_v30 }
  0x72   :  { %v600_v44 = vpop.eup %599 }
  0x73   :  { %v602_v48 = vpop.eup %601  ;;  %v211_v50 = vxor.u32 2147483648, %v600_v44 }
  0x74   :  { %v208_v49 = vxor.u32 2147483648, %v602_v48  ;;  %v604_v8 = vpop.eup %603 }
  0x75   :  { %v421_v57 = vsel %vm419_vm6, %v211_v50, %v602_v48  ;;  %v212_v58 = vsel %vm210_vm9, %v211_v50, %v602_v48  ;;  %v104_v53 = vmul.f32 %v604_v8, %v742_v34 }
  0x76   :  { %v418_v60 = vsel %vm416_vm7, %v600_v44, %v208_v49  ;;  %v209_v61 = vsel %vm207_vm8, %v600_v44, %v208_v49 }
  0x77   :  { %v422_v62 = vsel %vm415_vm5, %v418_v60, %v421_v57  ;;  %v213_v1 = vsel %vm206_vm10, %v209_v61, %v212_v58  ;;  %v106_v14 = vsel %vm105_vm11, %v742_v34, %v104_v53 }
  0x78   :  { %v423_v2 = vsel %vm204_vm1, nan, %v422_v62  ;;  %v214_v3 = vsel %vm204_vm1, nan, %v213_v1  ;;  %vm519_vm1 = vcmp.lt.s32.totalorder %v518_v10, 2  ;;  %v109_v20 = vsel %vm107_vm12, %v108_v13, %v106_v14 }
  0x79   :  { %v528_v4 = vmul.f32 %v423_v2, %v102_v59  ;;  %v318_v63 = vmul.f32 %v214_v3, %v102_v59 }
  0x7b   :  { %532 = vrot.lane.b32.xlu0 %v528_v4, %s637_s0 }
  0x7c   :  { %v606_v11 = vpop.eup %605 }
  0x7d   :  { %v608_v46 = vpop.eup %607  ;;  %v314_v15 = vxor.u32 2147483648, %v606_v11 }
  0x7e   :  { %v311_v16 = vxor.u32 2147483648, %v608_v46 }
  0x7f   :  { %v525_v17 = vsel %vm523_vm13, %v314_v15, %v608_v46  ;;  %v315_v18 = vsel %vm313_vm14, %v314_v15, %v608_v46 }
  0x80   :  { %v522_v21 = vsel %vm520_vm15, %v606_v11, %v311_v16  ;;  %v312_v22 = vsel %vm310_vm0, %v606_v11, %v311_v16 }
  0x81   :  { %v526_v7 = vsel %vm519_vm1, %v522_v21, %v525_v17  ;;  %v316_v9 = vsel %vm309_vm2, %v312_v22, %v315_v18 }
  0x82   :  { %v527_v25 = vsel %vm307_vm3, nan, %v526_v7  ;;  %v317_v12 = vsel %vm307_vm3, nan, %v316_v9 }
  0x83   :  { %v529_v19 = vmul.f32 %v527_v25, %v109_v20  ;;  %v319_v24 = vmul.f32 %v317_v12, %v109_v20 }
  0x85   :  { %534 = vrot.lane.b32.xlu0 %v529_v19, %s637_s0 }
  0xed   :  { %v533_v26 = vpop.permute.xlu0 %532 }
  0xee   :  { %v539_v5 = vsel %vm538_vm4, %v318_v63, %v533_v26 }
  0xef   :  { %541 = vst [vmem:[#allocation3] sm:$0xff] %v539_v5 }
  0xf7   :  { %v535_v51 = vpop.permute.xlu0 %534 }
  0xf8   :  { %v540_v27 = vsel %vm538_vm4, %v319_v24, %v535_v51 }
  0xf9   :  { %542 = vst [vmem:[#allocation3 + $0x8] sm:$0xff] %v540_v27 }
  0xfa   :  { %620 = shalt.err (!%p617_p4)
}
  0xfb   :  { %s639_s21 = smov 128   ;;  %s640_s22 = smov 8  }
  0xfc   :  { %554 = dma.vmem_to_hbm [thread:$0]  %s549_s19, 256, %s784_s1, [#allocation4], %s639_s21, %s639_s21, %s640_s22  }
  0xfd   :  { %629 = dma.done.wait [#allocation4], 256  }
  0xfe   :  { %630 = vsyncadd [#allocation4], 4294967040 }
  0xff   :  { %558 = vsyncpa [#allocation4], 1 }

</bundles_post_ra>
